<compile_context>
chip_gen: v6e
topology: v6e:2x2x1
jax: 0.10.0
libtpu: 0.0.40
codegen_flags: <defaults>
</compile_context>

<pallas_src>
import jax
import jax.numpy as jnp
from jax.experimental import pallas as pl
from jax.experimental.pallas import tpu as pltpu

H1, H2 = 400, 300          # logical hidden sizes (PyTorch module)
H1_PAD, H2_PAD = 512, 384  # lane-aligned hidden sizes (multiples of 128)
TILE_B = 256               # batch tile (sweep 512-1024 on v6e if batch is huge)


def _round_up(x, m):
    return (x + m - 1) // m * m


def actor_kernel(x_ref, w1_ref, b1_ref, w2_ref, b2_ref, w3_ref, b3_ref, o_ref):
    # fc1 + ReLU : bf16 MXU matmul, f32 accumulate, f32 epilogue
    h1 = jnp.dot(x_ref[...], w1_ref[...], preferred_element_type=jnp.float32)
    h1 = jnp.maximum(h1 + b1_ref[...], 0.0)
    # fc2 + ReLU
    h2 = jnp.dot(h1.astype(jnp.bfloat16), w2_ref[...], preferred_element_type=jnp.float32)
    h2 = jnp.maximum(h2 + b2_ref[...], 0.0)
    # fc3 + tanh (tanh lands on the EUP slot -> effectively free)
    h3 = jnp.dot(h2.astype(jnp.bfloat16), w3_ref[...], preferred_element_type=jnp.float32)
    o_ref[...] = jnp.tanh(h3 + b3_ref[...]).astype(o_ref.dtype)


def actor_net_forward(state, params, action_size):
    """state: [B, state_size] f32. params: padded/bf16 params from prepare_params."""
    w1, b1, w2, b2, w3, b3 = (params["w1"], params["b1"], params["w2"],
                              params["b2"], params["w3"], params["b3"])
    B, state_size = state.shape
    a_pad = w3.shape[1]

    # Batch tiling: bound VMEM, pipeline activation DMAs, enable megacore sharding.
    tile_b = min(TILE_B, _round_up(B, 8))
    b_pad = _round_up(B, tile_b)
    x = state.astype(jnp.bfloat16)
    if b_pad != B:
        x = jnp.pad(x, ((0, b_pad - B), (0, 0)))

    const = lambda i: (0, 0)  # weights/biases stay resident across the batch grid
    out = pl.pallas_call(
        actor_kernel,
        out_shape=jax.ShapeDtypeStruct((b_pad, a_pad), jnp.float32),
        grid=(b_pad // tile_b,),
        in_specs=[
            pl.BlockSpec((tile_b, state_size), lambda i: (i, 0)),  # activations stream
            pl.BlockSpec((state_size, H1_PAD), const),
            pl.BlockSpec((1, H1_PAD), const),
            pl.BlockSpec((H1_PAD, H2_PAD), const),
            pl.BlockSpec((1, H2_PAD), const),
            pl.BlockSpec((H2_PAD, a_pad), const),
            pl.BlockSpec((1, a_pad), const),
        ],
        out_specs=pl.BlockSpec((tile_b, a_pad), lambda i: (i, 0)),
        compiler_params=pltpu.CompilerParams(
            dimension_semantics=("parallel",),          # v7x: split batch across 2 TCs
            vmem_limit_bytes=32 * 1024 * 1024,          # weights ~0.5 MiB; plenty of headroom
        ),
    )(x, w1, b1, w2, b2, w3, b3)
    return out[:B, :action_size]


def init_params_raw(key, state_size, action_size):
    """f32, unpadded params mimicking PyTorch nn.Linear default U[-1/sqrt(fan_in), +...]."""
    def linear(key, fan_in, fan_out):
        kw, kb = jax.random.split(key)
        bound = 1.0 / jnp.sqrt(fan_in)
        w = jax.random.uniform(kw, (fan_in, fan_out), jnp.float32, -bound, bound)
        b = jax.random.uniform(kb, (fan_out,), jnp.float32, -bound, bound)
        return w, b

    k1, k2, k3 = jax.random.split(key, 3)
    w1, b1 = linear(k1, state_size, H1)
    w2, b2 = linear(k2, H1, H2)
    w3, b3 = linear(k3, H2, action_size)
    return {"w1": w1, "b1": b1, "w2": w2, "b2": b2, "w3": w3, "b3": b3}


def prepare_params(raw, action_size):
    """Zero-pad feature dims to lane multiples of 128 and cast weights to bf16."""
    a_pad = max(128, _round_up(action_size, 128))

    def pad_w(w, rows, cols):
        w = jnp.pad(w, ((0, rows - w.shape[0]), (0, cols - w.shape[1])))
        return w.astype(jnp.bfloat16)

    def pad_b(b, cols):
        return jnp.pad(b, (0, cols - b.shape[0])).reshape(1, cols).astype(jnp.float32)

    return {
        "w1": pad_w(raw["w1"], raw["w1"].shape[0], H1_PAD),
        "b1": pad_b(raw["b1"], H1_PAD),
        "w2": pad_w(raw["w2"], H1_PAD, H2_PAD),
        "b2": pad_b(raw["b2"], H2_PAD),
        "w3": pad_w(raw["w3"], H2_PAD, a_pad),
        "b3": pad_b(raw["b3"], a_pad),
    }


def actor_net_reference_bf16(state, params, action_size):
    """Pure-JAX reference with the same numerics as the kernel (bf16 MXU inputs, f32 acc)."""
    def mm(x, w):
        return jnp.dot(x.astype(jnp.bfloat16), w, preferred_element_type=jnp.float32)

    h1 = jnp.maximum(mm(state, params["w1"]) + params["b1"], 0.0)
    h2 = jnp.maximum(mm(h1, params["w2"]) + params["b2"], 0.0)
    return jnp.tanh(mm(h2, params["w3"]) + params["b3"])[:, :action_size]


def actor_net_reference_f32(state, raw):
    """Full-precision reference matching the original PyTorch module."""
    h1 = jnp.maximum(state @ raw["w1"] + raw["b1"], 0.0)
    h2 = jnp.maximum(h1 @ raw["w2"] + raw["b2"], 0.0)
    return jnp.tanh(h2 @ raw["w3"] + raw["b3"])


if __name__ == "__main__":
    key = jax.random.PRNGKey(0)
    k_state, k_params = jax.random.split(key)

    batch = 2
    state_size = 8
    action_size = 4

    state = jax.random.normal(k_state, (batch, state_size), dtype=jnp.float32)
    raw = init_params_raw(k_params, state_size, action_size)
    params = prepare_params(raw, action_size)

    out = actor_net_forward(state, params, action_size)
    jax.block_until_ready(out)
    assert out.shape == (batch, action_size)

    # Strict check vs a reference with identical bf16/f32 numerics.
    ref_bf16 = actor_net_reference_bf16(state, params, action_size)
    assert jnp.allclose(out, ref_bf16, atol=1e-4, rtol=1e-4), \
        float(jnp.max(jnp.abs(out - ref_bf16)))

    # Loose sanity check vs the full-f32 PyTorch-equivalent math (bf16 weight rounding only).
    ref_f32 = actor_net_reference_f32(state, raw)
    assert jnp.allclose(out, ref_f32, atol=5e-2, rtol=5e-2)

    print("KERNEL_OK")
</pallas_src>

<mosaic_0001>
module attributes {stable_mosaic.version = 11 : i64} {
  func.func @actor_kernel(%arg0: i32, %arg1: memref<8x8xbf16, #tpu.memory_space<vmem>>, %arg2: memref<8x512xbf16, #tpu.memory_space<vmem>>, %arg3: memref<1x512xf32, #tpu.memory_space<vmem>>, %arg4: memref<512x384xbf16, #tpu.memory_space<vmem>>, %arg5: memref<1x384xf32, #tpu.memory_space<vmem>>, %arg6: memref<384x128xbf16, #tpu.memory_space<vmem>>, %arg7: memref<1x128xf32, #tpu.memory_space<vmem>>, %arg8: memref<8x128xf32, #tpu.memory_space<vmem>>) attributes {dimension_semantics = [#tpu.dimension_semantics<parallel>], iteration_bounds = array<i64: 1>, scalar_prefetch = 0 : i64, scratch_operands = 0 : i64, tpu.core_type = #tpu.core_type<tc>, window_params = [{transform_indices = @transform_0, window_bounds = array<i64: 8, 8>}, {pipeline_mode = #tpu.pipeline_mode<synchronous>, transform_indices = @transform_1, window_bounds = array<i64: 8, 512>}, {pipeline_mode = #tpu.pipeline_mode<synchronous>, transform_indices = @transform_2, window_bounds = array<i64: 1, 512>}, {pipeline_mode = #tpu.pipeline_mode<synchronous>, transform_indices = @transform_3, window_bounds = array<i64: 512, 384>}, {pipeline_mode = #tpu.pipeline_mode<synchronous>, transform_indices = @transform_4, window_bounds = array<i64: 1, 384>}, {pipeline_mode = #tpu.pipeline_mode<synchronous>, transform_indices = @transform_5, window_bounds = array<i64: 384, 128>}, {pipeline_mode = #tpu.pipeline_mode<synchronous>, transform_indices = @transform_6, window_bounds = array<i64: 1, 128>}, {transform_indices = @transform_7, window_bounds = array<i64: 8, 128>}]} {
    %c0 = arith.constant 0 : index
    %c0_0 = arith.constant 0 : index
    %0 = vector.load %arg1[%c0, %c0_0] : memref<8x8xbf16, #tpu.memory_space<vmem>>, vector<8x8xbf16>
    %c0_1 = arith.constant 0 : index
    %c0_2 = arith.constant 0 : index
    %1 = vector.load %arg2[%c0_1, %c0_2] : memref<8x512xbf16, #tpu.memory_space<vmem>>, vector<8x512xbf16>
    %cst = arith.constant dense<0.000000e+00> : vector<8x512xf32>
    %2 = tpu.matmul %0, %1, %cst {dimension_numbers = #tpu.dot_dimension_numbers<[1], [0], [0], [1], [0, 0, 1, 1], [], []>} : vector<8x8xbf16>, vector<8x512xbf16>, vector<8x512xf32> -> vector<8x512xf32>
    %c0_3 = arith.constant 0 : index
    %c0_4 = arith.constant 0 : index
    %3 = vector.load %arg3[%c0_3, %c0_4] : memref<1x512xf32, #tpu.memory_space<vmem>>, vector<1x512xf32>
    %4 = vector.broadcast %3 : vector<1x512xf32> to vector<8x512xf32>
    %5 = arith.addf %2, %4 : vector<8x512xf32>
    %cst_5 = arith.constant 0.000000e+00 : f32
    %6 = vector.broadcast %cst_5 : f32 to vector<8x512xf32>
    %7 = arith.maximumf %5, %6 : vector<8x512xf32>
    %8 = arith.truncf %7 : vector<8x512xf32> to vector<8x512xbf16>
    %c0_6 = arith.constant 0 : index
    %c0_7 = arith.constant 0 : index
    %9 = vector.load %arg4[%c0_6, %c0_7] : memref<512x384xbf16, #tpu.memory_space<vmem>>, vector<512x384xbf16>
    %cst_8 = arith.constant dense<0.000000e+00> : vector<8x384xf32>
    %10 = tpu.matmul %8, %9, %cst_8 {dimension_numbers = #tpu.dot_dimension_numbers<[1], [0], [0], [1], [0, 0, 1, 1], [], []>} : vector<8x512xbf16>, vector<512x384xbf16>, vector<8x384xf32> -> vector<8x384xf32>
    %c0_9 = arith.constant 0 : index
    %c0_10 = arith.constant 0 : index
    %11 = vector.load %arg5[%c0_9, %c0_10] : memref<1x384xf32, #tpu.memory_space<vmem>>, vector<1x384xf32>
    %12 = vector.broadcast %11 : vector<1x384xf32> to vector<8x384xf32>
    %13 = arith.addf %10, %12 : vector<8x384xf32>
    %cst_11 = arith.constant 0.000000e+00 : f32
    %14 = vector.broadcast %cst_11 : f32 to vector<8x384xf32>
    %15 = arith.maximumf %13, %14 : vector<8x384xf32>
    %16 = arith.truncf %15 : vector<8x384xf32> to vector<8x384xbf16>
    %c0_12 = arith.constant 0 : index
    %c0_13 = arith.constant 0 : index
    %17 = vector.load %arg6[%c0_12, %c0_13] : memref<384x128xbf16, #tpu.memory_space<vmem>>, vector<384x128xbf16>
    %cst_14 = arith.constant dense<0.000000e+00> : vector<8x128xf32>
    %18 = tpu.matmul %16, %17, %cst_14 {dimension_numbers = #tpu.dot_dimension_numbers<[1], [0], [0], [1], [0, 0, 1, 1], [], []>} : vector<8x384xbf16>, vector<384x128xbf16>, vector<8x128xf32> -> vector<8x128xf32>
    %c0_15 = arith.constant 0 : index
    %c0_16 = arith.constant 0 : index
    %19 = vector.load %arg7[%c0_15, %c0_16] : memref<1x128xf32, #tpu.memory_space<vmem>>, vector<1x128xf32>
    %20 = vector.broadcast %19 : vector<1x128xf32> to vector<8x128xf32>
    %21 = arith.addf %18, %20 : vector<8x128xf32>
    %22 = math.tanh %21 : vector<8x128xf32>
    %c0_17 = arith.constant 0 : index
    %c0_18 = arith.constant 0 : index
    %23 = vector.load %arg8[%c0_17, %c0_18] : memref<8x128xf32, #tpu.memory_space<vmem>>, vector<8x128xf32>
    tpu.vector_store %arg8[%c0_17, %c0_18], %22 {strides = array<i32>} : memref<8x128xf32, #tpu.memory_space<vmem>>, vector<8x128xf32>,
    return
  }
  func.func @transform_0(%arg0: i32) -> (i32, i32) {
    %c0_i32 = arith.constant 0 : i32
    %c0_i32_0 = arith.constant 0 : i32
    return %arg0, %c0_i32 : i32, i32
  }
  func.func @transform_1(%arg0: i32) -> (i32, i32) {
    %c0_i32 = arith.constant 0 : i32
    %c0_i32_0 = arith.constant 0 : i32
    %c0_i32_1 = arith.constant 0 : i32
    return %c0_i32, %c0_i32_0 : i32, i32
  }
  func.func @transform_2(%arg0: i32) -> (i32, i32) {
    %c0_i32 = arith.constant 0 : i32
    %c0_i32_0 = arith.constant 0 : i32
    %c0_i32_1 = arith.constant 0 : i32
    return %c0_i32, %c0_i32_0 : i32, i32
  }
  func.func @transform_3(%arg0: i32) -> (i32, i32) {
    %c0_i32 = arith.constant 0 : i32
    %c0_i32_0 = arith.constant 0 : i32
    %c0_i32_1 = arith.constant 0 : i32
    return %c0_i32, %c0_i32_0 : i32, i32
  }
  func.func @transform_4(%arg0: i32) -> (i32, i32) {
    %c0_i32 = arith.constant 0 : i32
    %c0_i32_0 = arith.constant 0 : i32
    %c0_i32_1 = arith.constant 0 : i32
    return %c0_i32, %c0_i32_0 : i32, i32
  }
  func.func @transform_5(%arg0: i32) -> (i32, i32) {
    %c0_i32 = arith.constant 0 : i32
    %c0_i32_0 = arith.constant 0 : i32
    %c0_i32_1 = arith.constant 0 : i32
    return %c0_i32, %c0_i32_0 : i32, i32
  }
  func.func @transform_6(%arg0: i32) -> (i32, i32) {
    %c0_i32 = arith.constant 0 : i32
    %c0_i32_0 = arith.constant 0 : i32
    %c0_i32_1 = arith.constant 0 : i32
    return %c0_i32, %c0_i32_0 : i32, i32
  }
  func.func @transform_7(%arg0: i32) -> (i32, i32) {
    %c0_i32 = arith.constant 0 : i32
    %c0_i32_0 = arith.constant 0 : i32
    return %arg0, %c0_i32 : i32, i32
  }
}

</mosaic_0001>

<bundles_post_ra>
// kernel: tpu_custom_call.1
= control target key start
LH: loop header
LB: loop body
LE: loop exit
PB: predicated region body
PF: predicated region fallthrough
CT: control target
= control target key end

     0   :  { %12 = vsyncpa [#allocation3], 0  ;;  %s1981_s0 = inlined_call_operand.hbm [shape: bf16[8,8], index: 0, kind: input, shape index: {}]   ;;  %s1982_s1 = inlined_call_operand.hbm [shape: bf16[8,512], index: 1, kind: input, shape index: {}]   ;;  %s1983_s2 = inlined_call_operand.hbm [shape: f32[1,512], index: 2, kind: input, shape index: {}]   ;;  %s1984_s3 = inlined_call_operand.hbm [shape: bf16[512,384], index: 3, kind: input, shape index: {}]   ;;  %s1985_s4 = inlined_call_operand.vmem [shape: f32[1,384], index: 4, kind: input, shape index: {}]   ;;  %s1986_s5 = inlined_call_operand.hbm [shape: bf16[384,128], index: 5, kind: input, shape index: {}]   ;;  %s1987_s6 = inlined_call_operand.vmem [shape: f32[1,128], index: 6, kind: input, shape index: {}]   ;;  %s1988_s7 = inlined_call_operand.hbm [shape: f32[8,128], index: 7, kind: output, shape index: {}]  }
   0x1   :  { %13 = vsyncpa [#allocation6], 0 }
   0x2   :  { %14 = vsyncpa [#allocation9], 0 }
   0x3   :  { %15 = vsyncpa [#allocation4], 0  ;;  %s1878_s24 = smov [#allocation5]   ;;  %s1879_s26 = smov [#allocation8]  }
   0x4   :  { %s32_s25 = sshll.u32 %s1878_s24, 4  ;;  %s51_s27 = sshll.u32 %s1879_s26, 4  ;;  %s33_s25 = int_to_ptr.vmem [resolvable:$true] %s32_s25  ;;  %s52_s27 = int_to_ptr.vmem [resolvable:$true] %s51_s27 }
   0x5   :  { %s1758_s28 = scalar_lea.vmem %s33_s25, 256  ;;  %p1763_p1 = scmp.lt.s32.totalorder %s33_s25, %s33_s25 }
   0x6   :  { %p1759_p0 = scmp.ne.s32.totalorder %s33_s25, %s1758_s28  ;;  %p1764_p2 = scmp.lt.s32.totalorder %s1758_s28, %s1758_s28 }
   0x8   :  { %p1765_p3 = por %p1764_p2, %p1763_p1 }
   0xa   :  { %p1766_p4 = pnand %p1765_p3, %p1759_p0 }
   0xc   :  { %1769 = shalt.err (!%p1766_p4)
}
   0xd   :  { %35 = dma.hbm_to_vmem [thread:$0]  %s1982_s1, 256, %s33_s25, [#allocation6]  }
   0xe   :  { %s1778_s8 = scalar_lea.vmem %s52_s27, 12288  ;;  %p1783_p6 = scmp.lt.s32.totalorder %s52_s27, %s52_s27 }
   0xf   :  { %p1779_p5 = scmp.ne.s32.totalorder %s52_s27, %s1778_s8  ;;  %p1784_p7 = scmp.lt.s32.totalorder %s1778_s8, %s1778_s8 }
  0x11   :  { %p1785_p8 = por %p1784_p7, %p1783_p6 }
  0x13   :  { %p1786_p9 = pnand %p1785_p8, %p1779_p5 }
  0x15   :  { %1789 = shalt.err (!%p1786_p9)
}
  0x16   :  { %s1880_s9 = smov 192   ;;  %s1881_s10 = smov 12  }
  0x17   :  { %57 = dma.hbm_to_vmem [thread:$0]  %s1984_s3, 12288, %s52_s27, [#allocation9], %s1880_s9, %s1880_s9, %s1881_s10  }
  0x18   :  { %s1882_s13 = smov [#allocation2]   ;;  %s1883_s15 = smov [#allocation7]  }
  0x19   :  { %s22_s14 = sshll.u32 %s1882_s13, 4  ;;  %s42_s16 = sshll.u32 %s1883_s15, 4  ;;  %s23_s14 = int_to_ptr.vmem [resolvable:$true] %s22_s14  ;;  %s43_s16 = int_to_ptr.vmem [resolvable:$true] %s42_s16 }
  0x1a   :  { %s1798_s1 = scalar_lea.vmem %s23_s14, 64  ;;  %p1803_p11 = scmp.lt.s32.totalorder %s23_s14, %s23_s14 }
  0x1b   :  { %p1799_p10 = scmp.ne.s32.totalorder %s23_s14, %s1798_s1  ;;  %p1804_p12 = scmp.lt.s32.totalorder %s1798_s1, %s1798_s1 }
  0x1d   :  { %p1805_p13 = por %p1804_p12, %p1803_p11 }
  0x1f   :  { %p1806_p0 = pnand %p1805_p13, %p1799_p10 }
  0x21   :  { %1809 = shalt.err (!%p1806_p0)
}
  0x22   :  { %25 = dma.hbm_to_vmem [thread:$0]  %s1981_s0, 64, %s23_s14, [#allocation3]  }
  0x23   :  { %s1818_s19 = scalar_lea.vmem %s43_s16, 64  ;;  %p1823_p2 = scmp.lt.s32.totalorder %s43_s16, %s43_s16 }
  0x24   :  { %p1819_p1 = scmp.ne.s32.totalorder %s43_s16, %s1818_s19  ;;  %p1824_p3 = scmp.lt.s32.totalorder %s1818_s19, %s1818_s19 }
  0x26   :  { %p1825_p4 = por %p1824_p3, %p1823_p2 }
  0x28   :  { %p1826_p5 = pnand %p1825_p4, %p1819_p1 }
  0x2a   :  { %1829 = shalt.err (!%p1826_p5)
}
  0x2b   :  { %45 = dma.hbm_to_vmem [thread:$0]  %s1983_s2, 64, %s43_s16, [#allocation6]  }
  0x2c   :  { %s1884_s21 = smov [#allocation10]  }
  0x2d   :  { %s65_s22 = sshll.u32 %s1884_s21, 4  ;;  %s66_s22 = int_to_ptr.vmem [resolvable:$true] %s65_s22 }
  0x2e   :  { %s1838_s23 = scalar_lea.vmem %s66_s22, 3072  ;;  %p1843_p7 = scmp.lt.s32.totalorder %s66_s22, %s66_s22 }
  0x2f   :  { %p1839_p6 = scmp.ne.s32.totalorder %s66_s22, %s1838_s23  ;;  %p1844_p8 = scmp.lt.s32.totalorder %s1838_s23, %s1838_s23 }
  0x31   :  { %p1845_p9 = por %p1844_p8, %p1843_p7 }
  0x33   :  { %p1846_p10 = pnand %p1845_p9, %p1839_p6 }
  0x35   :  { %1849 = shalt.err (!%p1846_p10)
}
  0x36   :  { %s1885_s0 = smov 64   ;;  %s1886_s24 = smov 4  }
  0x37   :  { %71 = dma.hbm_to_vmem [thread:$0]  %s1986_s5, 3072, %s66_s22, [#allocation9], %s1885_s0, %s1885_s0, %s1886_s24  }
  0x38   :  { %1870 = dma.done.wait [#allocation3], 64  }
  0x39   :  { %1871 = vsyncadd [#allocation3], 4294967232 }
  0x3a   :  { %1872 = dma.done.wait [#allocation6], 320  }
  0x3b   :  { %1873 = vsyncadd [#allocation6], 4294966976 }
  0x3c   :  { %1874 = dma.done.wait [#allocation9], 15360  }
  0x3d   :  { %1875 = vsyncadd [#allocation9], 4294951936  ;;  %v1887_v0 = vmov 0   ;;  %v91_v1 = vld [vmem:[#allocation5] sm:$0xff]  ;;  %vm129_vm0 = vcmask 1043456   ;;  %v92_v2 = vld [vmem:[#allocation5 + $0x8] sm:$0xff] }
  0x3e   :  { %174 = vmatprep.mubr.bf16.mxu0 %v1887_v0  ;;  %215 = vmatprep.mubr.bf16.mxu1 %v1887_v0  ;;  %v1356_v3 = vcombine.high %v91_v1, %v91_v1  ;;  %v1358_v4 = vcombine.high %v92_v2, %v92_v2  ;;  %v1355_v5 = vcombine.low %v91_v1, %v91_v1  ;;  %v90_v7 = vld [vmem:[#allocation2] sm:$0xf]  ;;  %v1598_v8 = vld [vmem:[#allocation8 + $0xac] ss:$12 sps:$4 sm:$0xff]   ;;  %vm125_vm1 = vcmask 64512   ;;  %s1890_s28 = smov [#allocation11]  }
  0x3f   :  { %v1357_v6 = vcombine.low %v92_v2, %v92_v2  ;;  %v1596_v11 = vld [vmem:[#allocation8 + $0xa8] ss:$12 sps:$4 sm:$0xff]   ;;  %v1601_v12 = vld [vmem:[#allocation8 + $0x22c] ss:$12 sps:$4 sm:$0xff]   ;;  %v1602_v16 = vld [vmem:[#allocation8 + $0x90] ss:$12 sps:$4 sm:$0xff]  }
  0x40   :  { %1359 = vmatprep.subr.msk.bf16.mxu0 %vm129_vm0, %v1356_v3  ;;  %1361 = vmatprep.subr.msk.bf16.mxu1 %vm129_vm0, %v1358_v4  ;;  %v131_v9 = vsel %vm129_vm0, %v1355_v5, 0  ;;  %v1599_v13 = vld [vmem:[#allocation8 + $0x228] ss:$12 sps:$4 sm:$0xff]   ;;  %v1605_v17 = vld [vmem:[#allocation8 + $0x210] ss:$12 sps:$4 sm:$0xff]   ;;  %vm1889_vm2 = vmmov 0  }
  0x41   :  { %v137_v10 = vsel %vm129_vm0, %v1357_v6, 0  ;;  %157 = vmatpush1.bf16.msra.mxu0 %v131_v9  ;;  %v1604_v14 = vld [vmem:[#allocation8 + $0x94] ss:$12 sps:$4 sm:$0xff]   ;;  %v1610_v18 = vld [vmem:[#allocation8 + $0x7c] ss:$12 sps:$4 sm:$0xff]   ;;  %s1344_s29 = sshll.u32 %s1890_s28, 4  ;;  %s1345_s29 = int_to_ptr.vmem [resolvable:$true] %s1344_s29 }
  0x42   :  { %198 = vmatpush1.bf16.msra.mxu1 %v137_v10  ;;  %889 = vmatprep.subr.bf16.mxu0 %v1598_v8  ;;  %v1607_v15 = vld [vmem:[#allocation8 + $0x214] ss:$12 sps:$4 sm:$0xff]   ;;  %v1613_v19 = vld [vmem:[#allocation8 + $0x1fc] ss:$12 sps:$4 sm:$0xff]   ;;  %v1608_v20 = vld [vmem:[#allocation8 + $0x78] ss:$12 sps:$4 sm:$0xff]   ;;  %p1855_p12 = scmp.lt.s32.totalorder %s1345_s29, %s1345_s29 }
  0x43   :  { %930 = vmatprep.subr.bf16.mxu1 %v1601_v12  ;;  %v1611_v21 = vld [vmem:[#allocation8 + $0x1f8] ss:$12 sps:$4 sm:$0xff]   ;;  %v1614_v24 = vld [vmem:[#allocation8 + $0x60] ss:$12 sps:$4 sm:$0xff]   ;;  %v1620_v28 = vld [vmem:[#allocation8 + $0x48] ss:$12 sps:$4 sm:$0xff]   ;;  %v95_v12 = vlaneseq }
  0x44   :  { %1360 = vmatmul.mubr.msk.bf16.vlgmr.msra.gmra.mxu0 %vm125_vm1, %v90_v7  ;;  %v1616_v22 = vld [vmem:[#allocation8 + $0x64] ss:$12 sps:$4 sm:$0xff]   ;;  %v1617_v25 = vld [vmem:[#allocation8 + $0x1e0] ss:$12 sps:$4 sm:$0xff]   ;;  %v1623_v29 = vld [vmem:[#allocation8 + $0x1c8] ss:$12 sps:$4 sm:$0xff]  }
  0x45   :  { %1362 = vmatmul.mubr.msk.bf16.vlgmr.msra.gmra.mxu1 %vm125_vm1, %v90_v7  ;;  %890 = vmatpush1.bf16.msra.mxu0 %v1596_v11  ;;  %v1619_v23 = vld [vmem:[#allocation8 + $0x1e4] ss:$12 sps:$4 sm:$0xff]   ;;  %v1622_v26 = vld [vmem:[#allocation8 + $0x4c] ss:$12 sps:$4 sm:$0xff]   ;;  %v1628_v30 = vld [vmem:[#allocation8 + $0x34] ss:$12 sps:$4 sm:$0xff]  }
  0x46   :  { %931 = vmatpush1.bf16.msra.mxu1 %v1599_v13  ;;  %891 = vmatprep.subr.bf16.mxu0 %v1604_v14  ;;  %v1625_v27 = vld [vmem:[#allocation8 + $0x1cc] ss:$12 sps:$4 sm:$0xff]   ;;  %v1631_v31 = vld [vmem:[#allocation8 + $0x1b4] ss:$12 sps:$4 sm:$0xff]   ;;  %v1626_v32 = vld [vmem:[#allocation8 + $0x30] ss:$12 sps:$4 sm:$0xff]  }
  0x47   :  { %932 = vmatprep.subr.bf16.mxu1 %v1607_v15  ;;  %v1629_v33 = vld [vmem:[#allocation8 + $0x1b0] ss:$12 sps:$4 sm:$0xff]   ;;  %v1632_v36 = vld [vmem:[#allocation8 + $0x18] ss:$12 sps:$4 sm:$0xff]   ;;  %v1638_v40 = vld [vmem:[#allocation8] ss:$12 sps:$4 sm:$0xff]  }
  0x48   :  { %v1634_v34 = vld [vmem:[#allocation8 + $0x1c] ss:$12 sps:$4 sm:$0xff]   ;;  %v1635_v37 = vld [vmem:[#allocation8 + $0x198] ss:$12 sps:$4 sm:$0xff]   ;;  %v1641_v41 = vld [vmem:[#allocation8 + $0x180] ss:$12 sps:$4 sm:$0xff]  }
  0x49   :  { %892 = vmatpush1.bf16.msra.mxu0 %v1602_v16  ;;  %v1637_v35 = vld [vmem:[#allocation8 + $0x19c] ss:$12 sps:$4 sm:$0xff]   ;;  %v1640_v38 = vld [vmem:[#allocation8 + $0x4] ss:$12 sps:$4 sm:$0xff]   ;;  %v1646_v42 = vld [vmem:[#allocation8 + $0x16c] ss:$12 sps:$4 sm:$0xff]  }
  0x4a   :  { %933 = vmatpush1.bf16.msra.mxu1 %v1605_v17  ;;  %893 = vmatprep.subr.bf16.mxu0 %v1610_v18  ;;  %v1643_v39 = vld [vmem:[#allocation8 + $0x184] ss:$12 sps:$4 sm:$0xff]   ;;  %v1649_v43 = vld [vmem:[#allocation8 + $0x2ec] ss:$12 sps:$4 sm:$0xff]   ;;  %v1644_v44 = vld [vmem:[#allocation8 + $0x168] ss:$12 sps:$4 sm:$0xff]  }
  0x4b   :  { %934 = vmatprep.subr.bf16.mxu1 %v1613_v19  ;;  %v1647_v45 = vld [vmem:[#allocation8 + $0x2e8] ss:$12 sps:$4 sm:$0xff]   ;;  %v1650_v48 = vld [vmem:[#allocation8 + $0x150] ss:$12 sps:$4 sm:$0xff]   ;;  %v1656_v52 = vld [vmem:[#allocation8 + $0x138] ss:$12 sps:$4 sm:$0xff]  }
  0x4c   :  { %v1652_v46 = vld [vmem:[#allocation8 + $0x154] ss:$12 sps:$4 sm:$0xff]   ;;  %v1653_v49 = vld [vmem:[#allocation8 + $0x2d0] ss:$12 sps:$4 sm:$0xff]   ;;  %v1659_v53 = vld [vmem:[#allocation8 + $0x2b8] ss:$12 sps:$4 sm:$0xff]  }
  0x4d   :  { %894 = vmatpush1.bf16.msra.mxu0 %v1608_v20  ;;  %v1655_v47 = vld [vmem:[#allocation8 + $0x2d4] ss:$12 sps:$4 sm:$0xff]   ;;  %v1658_v50 = vld [vmem:[#allocation8 + $0x13c] ss:$12 sps:$4 sm:$0xff]   ;;  %v1664_v54 = vld [vmem:[#allocation8 + $0x124] ss:$12 sps:$4 sm:$0xff]  }
  0x4e   :  { %935 = vmatpush1.bf16.msra.mxu1 %v1611_v21  ;;  %895 = vmatprep.subr.bf16.mxu0 %v1616_v22  ;;  %v1661_v51 = vld [vmem:[#allocation8 + $0x2bc] ss:$12 sps:$4 sm:$0xff]   ;;  %v1667_v55 = vld [vmem:[#allocation8 + $0x2a4] ss:$12 sps:$4 sm:$0xff]   ;;  %v1662_v56 = vld [vmem:[#allocation8 + $0x120] ss:$12 sps:$4 sm:$0xff]  }
  0x4f   :  { %936 = vmatprep.subr.bf16.mxu1 %v1619_v23  ;;  %v1665_v57 = vld [vmem:[#allocation8 + $0x2a0] ss:$12 sps:$4 sm:$0xff]   ;;  %v1668_v60 = vld [vmem:[#allocation8 + $0x108] ss:$12 sps:$4 sm:$0xff]   ;;  %v1674_v0 = vld [vmem:[#allocation8 + $0xf0] ss:$12 sps:$4 sm:$0xff]  }
  0x50   :  { %v1670_v58 = vld [vmem:[#allocation8 + $0x10c] ss:$12 sps:$4 sm:$0xff]   ;;  %v1671_v61 = vld [vmem:[#allocation8 + $0x288] ss:$12 sps:$4 sm:$0xff]   ;;  %v1677_v1 = vld [vmem:[#allocation8 + $0x270] ss:$12 sps:$4 sm:$0xff]  }
  0x51   :  { %896 = vmatpush1.bf16.msra.mxu0 %v1614_v24  ;;  %v1673_v59 = vld [vmem:[#allocation8 + $0x28c] ss:$12 sps:$4 sm:$0xff]   ;;  %v1676_v62 = vld [vmem:[#allocation8 + $0xf4] ss:$12 sps:$4 sm:$0xff]   ;;  %v1682_v2 = vld [vmem:[#allocation8 + $0xdc] ss:$12 sps:$4 sm:$0xff]  }
  0x52   :  { %937 = vmatpush1.bf16.msra.mxu1 %v1617_v25  ;;  %897 = vmatprep.subr.bf16.mxu0 %v1622_v26  ;;  %v1679_v63 = vld [vmem:[#allocation8 + $0x274] ss:$12 sps:$4 sm:$0xff]   ;;  %v1685_v3 = vld [vmem:[#allocation8 + $0x25c] ss:$12 sps:$4 sm:$0xff]   ;;  %v1680_v4 = vld [vmem:[#allocation8 + $0xd8] ss:$12 sps:$4 sm:$0xff]  }
  0x53   :  { %938 = vmatprep.subr.bf16.mxu1 %v1625_v27  ;;  %v1683_v5 = vld [vmem:[#allocation8 + $0x258] ss:$12 sps:$4 sm:$0xff]   ;;  %v1686_v8 = vld [vmem:[#allocation8 + $0xc0] ss:$12 sps:$4 sm:$0xff]   ;;  %v1692_v10 = vld [vmem:[#allocation8 + $0x170] ss:$12 sps:$4 sm:$0xff]  }
  0x54   :  { %v1688_v6 = vld [vmem:[#allocation8 + $0xc4] ss:$12 sps:$4 sm:$0xff]   ;;  %v1689_v9 = vld [vmem:[#allocation8 + $0x240] ss:$12 sps:$4 sm:$0xff]   ;;  %v1946_v13 = vshrl.u32 %v95_v12, 7  ;;  %s1850_s30 = scalar_lea.vmem %s1345_s29, 128 }
  0x55   :  { %898 = vmatpush1.bf16.msra.mxu0 %v1620_v28  ;;  %v1691_v7 = vld [vmem:[#allocation8 + $0x244] ss:$12 sps:$4 sm:$0xff]   ;;  %v93_v16 = vld [vmem:[#allocation7] sm:$0xf]  ;;  %p1851_p11 = scmp.ne.s32.totalorder %s1345_s29, %s1850_s30  ;;  %p1856_p13 = scmp.lt.s32.totalorder %s1850_s30, %s1850_s30 }
  0x56   :  { %939 = vmatpush1.bf16.msra.mxu1 %v1623_v29  ;;  %899 = vmatprep.subr.bf16.mxu0 %v1628_v30  ;;  %v1693_v11 = vld [vmem:[#allocation8 + $0x2f0] ss:$12 sps:$4 sm:$0xff]   ;;  %v97_v14 = vsub.s32 0, %v1946_v13  ;;  %v105_v15 = vsub.s32 2, %v1946_v13  ;;  %v101_v17 = vsub.s32 1, %v1946_v13  ;;  %v109_v18 = vsub.s32 3, %v1946_v13 }
  0x57   :  { %940 = vmatprep.subr.bf16.mxu1 %v1631_v31  ;;  %v1727_v12 = vld [vmem:[#allocation10 + $0x30] sm:$0xff]   ;;  %v1459_v13 = vld [vmem:[%s1987_s6] ss:$0 sm:$0xff]  ;;  %p1857_p0 = por %p1856_p13, %p1855_p12 }
  0x58   :  { %v98_v19 = vrot.slane %v93_v16, %v97_v14  ;;  %v106_v20 = vrot.slane %v93_v16, %v105_v15  ;;  %v102_v21 = vrot.slane %v93_v16, %v101_v17  ;;  %v110_v22 = vrot.slane %v93_v16, %v109_v18  ;;  %v1728_v16 = vld [vmem:[#allocation10 + $0x68] sm:$0xff]  }
  0x59   :  { %900 = vmatpush1.bf16.msra.mxu0 %v1626_v32  ;;  %v1729_v18 = vld [vmem:[#allocation10 + $0x28] sm:$0xff]   ;;  %p1858_p1 = pnand %p1857_p0, %p1851_p11 }
  0x5a   :  { %941 = vmatpush1.bf16.msra.mxu1 %v1629_v33  ;;  %901 = vmatprep.subr.bf16.mxu0 %v1634_v34 }
  0x5b   :  { %942 = vmatprep.subr.bf16.mxu1 %v1637_v35 }
  0x5d   :  { %902 = vmatpush1.bf16.msra.mxu0 %v1632_v36 }
  0x5e   :  { %943 = vmatpush1.bf16.msra.mxu1 %v1635_v37  ;;  %903 = vmatprep.subr.bf16.mxu0 %v1640_v38 }
  0x5f   :  { %944 = vmatprep.subr.bf16.mxu1 %v1643_v39 }
  0x61   :  { %904 = vmatpush1.bf16.msra.mxu0 %v1638_v40 }
  0x62   :  { %945 = vmatpush1.bf16.msra.mxu1 %v1641_v41  ;;  %905 = vmatprep.subr.bf16.mxu0 %v1646_v42  ;;  %v1694_v42 = vld [vmem:[#allocation8 + $0xb0] ss:$12 sps:$4 sm:$0xff]  }
  0x63   :  { %946 = vmatprep.subr.bf16.mxu1 %v1649_v43  ;;  %v1695_v43 = vld [vmem:[#allocation8 + $0x230] ss:$12 sps:$4 sm:$0xff]  }
  0x65   :  { %906 = vmatpush2.bf16.msra.mxu0 %v1644_v44 }
  0x66   :  { %947 = vmatpush2.bf16.msra.mxu1 %v1647_v45  ;;  %907 = vmatprep.subr.bf16.mxu0 %v1652_v46  ;;  %v1696_v45 = vld [vmem:[#allocation8 + $0x158] ss:$12 sps:$4 sm:$0xff]  }
  0x67   :  { %948 = vmatprep.subr.bf16.mxu1 %v1655_v47  ;;  %v1697_v46 = vld [vmem:[#allocation8 + $0x2d8] ss:$12 sps:$4 sm:$0xff]  }
  0x68   :  { %v1698_v47 = vld [vmem:[#allocation8 + $0x98] ss:$12 sps:$4 sm:$0xff]  }
  0x69   :  { %908 = vmatpush2.bf16.msra.mxu0 %v1650_v48  ;;  %v1699_v48 = vld [vmem:[#allocation8 + $0x218] ss:$12 sps:$4 sm:$0xff]  }
  0x6a   :  { %949 = vmatpush2.bf16.msra.mxu1 %v1653_v49  ;;  %909 = vmatprep.subr.bf16.mxu0 %v1658_v50  ;;  %v1700_v49 = vld [vmem:[#allocation8 + $0x140] ss:$12 sps:$4 sm:$0xff]  }
  0x6b   :  { %950 = vmatprep.subr.bf16.mxu1 %v1661_v51  ;;  %v1701_v50 = vld [vmem:[#allocation8 + $0x2c0] ss:$12 sps:$4 sm:$0xff]  }
  0x6c   :  { %v1702_v51 = vld [vmem:[#allocation8 + $0x80] ss:$12 sps:$4 sm:$0xff]  }
  0x6d   :  { %910 = vmatpush2.bf16.msra.mxu0 %v1656_v52  ;;  %v1703_v52 = vld [vmem:[#allocation8 + $0x200] ss:$12 sps:$4 sm:$0xff]  }
  0x6e   :  { %951 = vmatpush2.bf16.msra.mxu1 %v1659_v53  ;;  %911 = vmatprep.subr.bf16.mxu0 %v1664_v54  ;;  %v1704_v53 = vld [vmem:[#allocation8 + $0x128] ss:$12 sps:$4 sm:$0xff]  }
  0x6f   :  { %952 = vmatprep.subr.bf16.mxu1 %v1667_v55  ;;  %v1705_v54 = vld [vmem:[#allocation8 + $0x2a8] ss:$12 sps:$4 sm:$0xff]  }
  0x70   :  { %v1706_v55 = vld [vmem:[#allocation8 + $0x68] ss:$12 sps:$4 sm:$0xff]  }
  0x71   :  { %912 = vmatpush2.bf16.msra.mxu0 %v1662_v56  ;;  %v1707_v56 = vld [vmem:[#allocation8 + $0x1e8] ss:$12 sps:$4 sm:$0xff]  }
  0x72   :  { %953 = vmatpush2.bf16.msra.mxu1 %v1665_v57  ;;  %913 = vmatprep.subr.bf16.mxu0 %v1670_v58  ;;  %v1708_v57 = vld [vmem:[#allocation8 + $0x110] ss:$12 sps:$4 sm:$0xff]  }
  0x73   :  { %954 = vmatprep.subr.bf16.mxu1 %v1673_v59  ;;  %v1709_v58 = vld [vmem:[#allocation8 + $0x290] ss:$12 sps:$4 sm:$0xff]  }
  0x74   :  { %v1710_v59 = vld [vmem:[#allocation8 + $0x50] ss:$12 sps:$4 sm:$0xff]  }
  0x75   :  { %914 = vmatpush2.bf16.msra.mxu0 %v1668_v60  ;;  %v1711_v60 = vld [vmem:[#allocation8 + $0x1d0] ss:$12 sps:$4 sm:$0xff]  }
  0x76   :  { %955 = vmatpush2.bf16.msra.mxu1 %v1671_v61  ;;  %915 = vmatprep.subr.bf16.mxu0 %v1676_v62  ;;  %v1712_v61 = vld [vmem:[#allocation8 + $0xf8] ss:$12 sps:$4 sm:$0xff]  }
  0x77   :  { %956 = vmatprep.subr.bf16.mxu1 %v1679_v63  ;;  %v1713_v62 = vld [vmem:[#allocation8 + $0x278] ss:$12 sps:$4 sm:$0xff]  }
  0x78   :  { %v1714_v63 = vld [vmem:[#allocation8 + $0x38] ss:$12 sps:$4 sm:$0xff]  }
  0x79   :  { %916 = vmatpush2.bf16.msra.mxu0 %v1674_v0  ;;  %v1715_v0 = vld [vmem:[#allocation8 + $0x1b8] ss:$12 sps:$4 sm:$0xff]  }
  0x7a   :  { %957 = vmatpush2.bf16.msra.mxu1 %v1677_v1  ;;  %917 = vmatprep.subr.bf16.mxu0 %v1682_v2  ;;  %v1716_v1 = vld [vmem:[#allocation8 + $0xe0] ss:$12 sps:$4 sm:$0xff]  }
  0x7b   :  { %958 = vmatprep.subr.bf16.mxu1 %v1685_v3  ;;  %v1717_v2 = vld [vmem:[#allocation8 + $0x260] ss:$12 sps:$4 sm:$0xff]  }
  0x7c   :  { %v1718_v3 = vld [vmem:[#allocation8 + $0x20] ss:$12 sps:$4 sm:$0xff]  }
  0x7d   :  { %918 = vmatpush2.bf16.msra.mxu0 %v1680_v4  ;;  %v1719_v4 = vld [vmem:[#allocation8 + $0x1a0] ss:$12 sps:$4 sm:$0xff]  }
  0x7e   :  { %959 = vmatpush2.bf16.msra.mxu1 %v1683_v5  ;;  %919 = vmatprep.subr.bf16.mxu0 %v1688_v6  ;;  %v1720_v5 = vld [vmem:[#allocation8 + $0xc8] ss:$12 sps:$4 sm:$0xff]  }
  0x7f   :  { %960 = vmatprep.subr.bf16.mxu1 %v1691_v7  ;;  %v1721_v6 = vld [vmem:[#allocation8 + $0x248] ss:$12 sps:$4 sm:$0xff]  }
  0x80   :  { %v1722_v7 = vld [vmem:[#allocation8 + $0x8] ss:$12 sps:$4 sm:$0xff]  }
  0x81   :  { %920 = vmatpush2.bf16.msra.mxu0 %v1686_v8  ;;  %v1723_v8 = vld [vmem:[#allocation8 + $0x188] ss:$12 sps:$4 sm:$0xff]  }
  0x82   :  { %961 = vmatpush2.bf16.msra.mxu1 %v1689_v9  ;;  %1484 = vmatprep.subr.bf16.mxu0 %v1692_v10  ;;  %v1724_v9 = vld [vmem:[#allocation10 + $0x78] sm:$0xff]  }
  0x83   :  { %1506 = vmatprep.subr.bf16.mxu1 %v1693_v11  ;;  %v1725_v10 = vld [vmem:[#allocation10 + $0x38] sm:$0xff]   ;;  %v1726_v11 = vld [vmem:[#allocation10 + $0x70] sm:$0xff]  }
 0x104   :  { %v176_v23 = vpop.f32.mrf.mxu0 }
 0x105   :  { %v217_v24 = vpop.f32.mrf.mxu1  ;;  %v177_v25 = vadd.f32 %v176_v23, %v98_v19  ;;  %v1730_v19 = vld [vmem:[#allocation10 + $0x60] sm:$0xff]   ;;  %v1734_v23 = vld [vmem:[#allocation10 + $0x50] sm:$0xff]  }
 0x106   :  { %v218_v26 = vadd.f32 %v217_v24, %v106_v20  ;;  %v178_v27 = vpop.f32.mrf.mxu0  ;;  %v1731_v20 = vld [vmem:[#allocation10 + $0x20] sm:$0xff]   ;;  %v1735_v24 = vld [vmem:[#allocation10 + $0x10] sm:$0xff]  }
 0x107   :  { %v219_v28 = vpop.f32.mrf.mxu1  ;;  %v179_v30 = vadd.f32 %v178_v27, %v102_v21  ;;  %v224_v32 = vmax.f32 %v177_v25, 0.0  ;;  %v1732_v21 = vld [vmem:[#allocation10 + $0x58] sm:$0xff]   ;;  %v1736_v25 = vld [vmem:[#allocation10 + $0x48] sm:$0xff]   ;;  %v1738_v27 = vld [vmem:[#allocation10 + $0x40] sm:$0xff]  }
 0x108   :  { %v226_v29 = vmax.f32 %v218_v26, 0.0  ;;  %v220_v31 = vadd.f32 %v219_v28, %v110_v22  ;;  %v180_v33 = vpop.f32.mrf.mxu0  ;;  %v1733_v22 = vld [vmem:[#allocation10 + $0x18] sm:$0xff]   ;;  %v1737_v26 = vld [vmem:[#allocation10 + $0x8] sm:$0xff]   ;;  %v1739_v28 = vld [vmem:[#allocation10] sm:$0xff]  }
 0x109   :  { %v221_v34 = vpop.f32.mrf.mxu1  ;;  %v225_v35 = vmax.f32 %v179_v30, 0.0  ;;  %v1960_v44 = vpack.c.bf16 %v224_v32, %v224_v32  ;;  %v1888_v30 = vmov 0.0   ;;  %v1742_v32 = vld [vmem:[#allocation10 + $0xa8] sm:$0xff]   ;;  %v1743_v33 = vld [vmem:[#allocation10 + $0xa0] sm:$0xff]  }
 0x10a   :  { %v227_v36 = vmax.f32 %v220_v31, 0.0  ;;  %v1958_v37 = vpack.c.bf16 %v226_v29, %v226_v29  ;;  %v181_v38 = vpop.f32.mrf.mxu0  ;;  %v1740_v29 = vld [vmem:[#allocation10 + $0xb8] sm:$0xff]   ;;  %v1741_v31 = vld [vmem:[#allocation10 + $0xb0] sm:$0xff]  }
 0x10b   :  { %v222_v39 = vpop.f32.mrf.mxu1  ;;  %v229_v40 = vpack.c.bf16 %v225_v35, %v225_v35  ;;  %v1744_v34 = vld [vmem:[#allocation10 + $0x98] sm:$0xff]   ;;  %v1745_v35 = vld [vmem:[#allocation10 + $0x90] sm:$0xff]   ;;  %v360_v38 = vld [vmem:[%s1985_s4] sm:$0x7] }
 0x10c   :  { %v231_v41 = vpack.c.bf16 %v227_v36, %v227_v36  ;;  %v1746_v36 = vld [vmem:[#allocation10 + $0x88] sm:$0xff]   ;;  %v365_v39 = vrot.slane %v360_v38, %v97_v14 }
 0x10d   :  { %921 = vmatprep.mubr.bf16.mxu0 %v229_v40 }
 0x10e   :  { %962 = vmatprep.mubr.bf16.mxu1 %v231_v41  ;;  %922 = vmatmul.mubr.bf16.vlgmr.msra.gmra.mxu0 %v1960_v44 }
 0x10f   :  { %963 = vmatmul.mubr.bf16.vlgmr.msra.gmra.mxu1 %v1958_v37  ;;  %1485 = vmatpush3.bf16.msra.mxu0 %v1694_v42 }
 0x110   :  { %1507 = vmatpush3.bf16.msra.mxu1 %v1695_v43  ;;  %1003 = vmatprep.mubr.bf16.mxu0 %v229_v40  ;;  %v369_v40 = vrot.slane %v360_v38, %v101_v17 }
 0x111   :  { %1043 = vmatprep.mubr.bf16.mxu1 %v231_v41  ;;  %1486 = vmatprep.subr.bf16.mxu0 %v1696_v45 }
 0x112   :  { %1508 = vmatprep.subr.bf16.mxu1 %v1697_v46 }
 0x113   :  { %1487 = vmatpush3.bf16.msra.mxu0 %v1698_v47 }
 0x114   :  { %1509 = vmatpush3.bf16.msra.mxu1 %v1699_v48  ;;  %1488 = vmatprep.subr.bf16.mxu0 %v1700_v49 }
 0x115   :  { %1510 = vmatprep.subr.bf16.mxu1 %v1701_v50 }
 0x117   :  { %1489 = vmatpush3.bf16.msra.mxu0 %v1702_v51 }
 0x118   :  { %1511 = vmatpush3.bf16.msra.mxu1 %v1703_v52  ;;  %1490 = vmatprep.subr.bf16.mxu0 %v1704_v53 }
 0x119   :  { %1512 = vmatprep.subr.bf16.mxu1 %v1705_v54 }
 0x11b   :  { %1491 = vmatpush3.bf16.msra.mxu0 %v1706_v55 }
 0x11c   :  { %1513 = vmatpush3.bf16.msra.mxu1 %v1707_v56  ;;  %1492 = vmatprep.subr.bf16.mxu0 %v1708_v57  ;;  %v373_v57 = vrot.slane %v360_v38, %v105_v15 }
 0x11d   :  { %1514 = vmatprep.subr.bf16.mxu1 %v1709_v58 }
 0x11f   :  { %1493 = vmatpush3.bf16.msra.mxu0 %v1710_v59 }
 0x120   :  { %1515 = vmatpush3.bf16.msra.mxu1 %v1711_v60  ;;  %1494 = vmatprep.subr.bf16.mxu0 %v1712_v61 }
 0x121   :  { %1516 = vmatprep.subr.bf16.mxu1 %v1713_v62 }
 0x123   :  { %1495 = vmatpush3.bf16.msra.mxu0 %v1714_v63 }
 0x124   :  { %1517 = vmatpush3.bf16.msra.mxu1 %v1715_v0  ;;  %1496 = vmatprep.subr.bf16.mxu0 %v1716_v1 }
 0x125   :  { %1518 = vmatprep.subr.bf16.mxu1 %v1717_v2 }
 0x127   :  { %1497 = vmatpush3.bf16.msra.mxu0 %v1718_v3 }
 0x128   :  { %1519 = vmatpush3.bf16.msra.mxu1 %v1719_v4  ;;  %1498 = vmatprep.subr.bf16.mxu0 %v1720_v5 }
 0x129   :  { %1520 = vmatprep.subr.bf16.mxu1 %v1721_v6 }
 0x12b   :  { %1499 = vmatpush3.bf16.msra.mxu0 %v1722_v7 }
 0x12c   :  { %1521 = vmatpush3.bf16.msra.mxu1 %v1723_v8  ;;  %1528 = vmatprep.subr.bf16.mxu0 %v1724_v9 }
 0x12d   :  { %1559 = vmatprep.subr.bf16.mxu1 %v1888_v30 }
 0x12e   :  { %1004 = vmatmul.mubr.bf16.vlgmr.msra.gmra.mxu0 %v1960_v44 }
 0x12f   :  { %1044 = vmatmul.mubr.bf16.vlgmr.msra.gmra.mxu1 %v1958_v37  ;;  %1529 = vmatpush3.bf16.msra.mxu0 %v1725_v10  ;;  %v1747_v37 = vld [vmem:[#allocation10 + $0x80] sm:$0xff]  }
 0x130   :  { %1530 = vmatprep.subr.bf16.mxu0 %v1726_v11  ;;  %1560 = vmatpush3.bf16.msra.mxu1 %v1740_v29 }
 0x131   :  { %1561 = vmatprep.subr.bf16.mxu1 %v1888_v30  ;;  %1575 = vmatprep.mubr.msk.bf16.mxu1 %vm1889_vm2, %v1888_v30 }
 0x133   :  { %1531 = vmatpush3.bf16.msra.mxu0 %v1727_v12 }
 0x134   :  { %1532 = vmatprep.subr.bf16.mxu0 %v1728_v16  ;;  %1562 = vmatpush3.bf16.msra.mxu1 %v1741_v31 }
 0x135   :  { %1563 = vmatprep.subr.bf16.mxu1 %v1888_v30 }
 0x137   :  { %1533 = vmatpush3.bf16.msra.mxu0 %v1729_v18 }
 0x138   :  { %1534 = vmatprep.subr.bf16.mxu0 %v1730_v19  ;;  %1564 = vmatpush3.bf16.msra.mxu1 %v1742_v32 }
 0x139   :  { %1565 = vmatprep.subr.bf16.mxu1 %v1888_v30 }
 0x13b   :  { %1535 = vmatpush3.bf16.msra.mxu0 %v1731_v20 }
 0x13c   :  { %1536 = vmatprep.subr.bf16.mxu0 %v1732_v21  ;;  %1566 = vmatpush3.bf16.msra.mxu1 %v1743_v33 }
 0x13d   :  { %1567 = vmatprep.subr.bf16.mxu1 %v1888_v30 }
 0x13f   :  { %1537 = vmatpush3.bf16.msra.mxu0 %v1733_v22 }
 0x140   :  { %1538 = vmatprep.subr.bf16.mxu0 %v1734_v23  ;;  %1568 = vmatpush3.bf16.msra.mxu1 %v1744_v34 }
 0x141   :  { %1569 = vmatprep.subr.bf16.mxu1 %v1888_v30 }
 0x143   :  { %1539 = vmatpush3.bf16.msra.mxu0 %v1735_v24 }
 0x144   :  { %1540 = vmatprep.subr.bf16.mxu0 %v1736_v25  ;;  %1570 = vmatpush3.bf16.msra.mxu1 %v1745_v35 }
 0x145   :  { %1571 = vmatprep.subr.bf16.mxu1 %v1888_v30 }
 0x147   :  { %1541 = vmatpush3.bf16.msra.mxu0 %v1737_v26 }
 0x148   :  { %1542 = vmatprep.subr.bf16.mxu0 %v1738_v27  ;;  %1572 = vmatpush3.bf16.msra.mxu1 %v1746_v36 }
 0x149   :  { %1573 = vmatprep.subr.bf16.mxu1 %v1888_v30 }
 0x14b   :  { %1543 = vmatpush3.bf16.msra.mxu0 %v1739_v28 }
 0x14c   :  { %1574 = vmatpush3.bf16.msra.mxu1 %v1747_v37 }
 0x1ce   :  { %v923_v41 = vpop.f32.mrf.mxu0 }
 0x1cf   :  { %v964_v42 = vpop.f32.mrf.mxu1  ;;  %v924_v43 = vadd.f32 %v923_v41, %v365_v39 }
 0x1d0   :  { %v925_v44 = vpop.f32.mrf.mxu0 }
 0x1d1   :  { %v966_v45 = vpop.f32.mrf.mxu1  ;;  %v965_v46 = vadd.f32 %v964_v42, %v924_v43  ;;  %v926_v47 = vadd.f32 %v925_v44, %v369_v40 }
 0x1d2   :  { %v927_v48 = vpop.f32.mrf.mxu0 }
 0x1d3   :  { %v968_v49 = vpop.f32.mrf.mxu1  ;;  %v967_v50 = vadd.f32 %v966_v45, %v926_v47  ;;  %v1051_v51 = vmax.f32 %v965_v46, 0.0 }
 0x1d4   :  { %v928_v52 = vpop.f32.mrf.mxu0 }
 0x1d5   :  { %v969_v53 = vpop.f32.mrf.mxu1  ;;  %v1052_v54 = vmax.f32 %v967_v50, 0.0  ;;  %v1054_v56 = vpack.c.bf16 %v1051_v51, %v1051_v51 }
 0x1d7   :  { %v1055_v55 = vpack.c.bf16 %v1052_v54, %v1052_v54 }
 0x1d9   :  { %1288 = vmatprep.mubr.bf16.mxu0 %v1055_v55 }
 0x1da   :  { %1289 = vmatmul.mubr.bf16.vlgmr.msra.gmra.mxu0 %v1054_v56 }
 0x1ee   :  { %v1500_v14 = vpop.f32.mrf.mxu0 }
 0x1ef   :  { %v1522_v17 = vpop.f32.mrf.mxu1 }
 0x1f0   :  { %v1501_v58 = vpop.f32.mrf.mxu0 }
 0x1f1   :  { %v1523_v59 = vpop.f32.mrf.mxu1  ;;  %v1502_v60 = vadd.f32 %v1501_v58, %v1500_v14 }
 0x1f2   :  { %v1503_v61 = vpop.f32.mrf.mxu0  ;;  %v1524_v0 = vadd.f32 %v1523_v59, %v1522_v17 }
 0x1f3   :  { %v1525_v62 = vpop.f32.mrf.mxu1  ;;  %v1006_v63 = vadd.f32 %v1502_v60, %v373_v57 }
 0x1f4   :  { %v1504_v1 = vpop.f32.mrf.mxu0 }
 0x1f5   :  { %v1526_v2 = vpop.f32.mrf.mxu1  ;;  %v1046_v3 = vadd.f32 %v1524_v0, %v1006_v63 }
 0x1f7   :  { %v1053_v4 = vmax.f32 %v1046_v3, 0.0 }
 0x1f9   :  { %v1056_v5 = vpack.c.bf16 %v1053_v4, %v1053_v4 }
 0x1fb   :  { %1576 = vmatmul.mubr.bf16.vlgmr.msra.gmra.mxu1 %v1056_v5 }
 0x29a   :  { %v1544_v6 = vpop.f32.mrf.mxu0 }
 0x29c   :  { %v1545_v7 = vpop.f32.mrf.mxu0 }
 0x29d   :  { %v1546_v10 = vadd.f32 %v1545_v7, %v1544_v6 }
 0x29e   :  { %v1547_v8 = vpop.f32.mrf.mxu0 }
 0x29f   :  { %v1291_v15 = vadd.f32 %v1546_v10, %v1459_v13 }
 0x2a0   :  { %v1548_v9 = vpop.f32.mrf.mxu0 }
 0x2bb   :  { %v1330_v11 = vpop.f32.mrf.mxu1 }
 0x2bc   :  { %v1331_v12 = vadd.f32 %v1330_v11, %v1291_v15 }
 0x2bd   :  { %v1577_v16 = vpop.f32.mrf.mxu1 }
 0x2be   :  { %1748 = vtanh.f32 %v1331_v12 }
 0x2bf   :  { %v1333_v18 = vpop.f32.mrf.mxu1 }
 0x2c1   :  { %v1578_v19 = vpop.f32.mrf.mxu1 }
 0x2cb   :  { %v1749_v20 = vpop.eup %1748 }
 0x2cc   :  { %1337 = vst [vmem:[#allocation11] sm:$0xff] %v1749_v20 }
 0x2cd   :  { %1861 = shalt.err (!%p1858_p1)
}
 0x2ce   :  { %1347 = dma.vmem_to_hbm [thread:$0]  %s1345_s29, 128, %s1988_s7, [#allocation4]  }
 0x2cf   :  { %1876 = dma.done.wait [#allocation4], 128  }
 0x2d0   :  { %1877 = vsyncadd [#allocation4], 4294967168 }
 0x2d1   :  { %1351 = vsyncpa [#allocation3], 1 }
 0x2d2   :  { %1352 = vsyncpa [#allocation6], 1 }
 0x2d3   :  { %1353 = vsyncpa [#allocation9], 1 }
 0x2d4   :  { %1354 = vsyncpa [#allocation4], 1 }

</bundles_post_ra>
